<compile_context>
chip_gen: v7x
topology: tpu7x:2x2x1
jax: 0.10.0
libtpu: 0.0.40
codegen_flags: <defaults>
</compile_context>

<pallas_src>
import jax
import jax.numpy as jnp
from jax.experimental import pallas as pl
from jax.experimental.pallas import tpu as pltpu


# ---------------------------------------------------------------------------
# helpers
# ---------------------------------------------------------------------------
def _round_up(x, m):
    return (x + m - 1) // m * m


def _largest_divisor_leq(n, k):
    k = max(1, min(n, k))
    for d in range(k, 0, -1):
        if n % d == 0:
            return d
    return 1


def _vmem_params():
    """Returns (per-block f32 score-byte budget, vmem_limit_bytes)."""
    try:
        cap = int(pltpu.get_tpu_info().vmem_capacity_bytes)
        if cap < 8 * 1024 * 1024:
            raise ValueError
    except Exception:
        cap = 64 * 1024 * 1024          # conservative (v7x-sized) fallback
    # Real per-step residency ~ 2x double-buffered input (native dtype) + a few
    # (C, ts) f32 temporaries, so keep the f32 score block around cap/24.
    budget = max(512 * 1024, min(4 * 1024 * 1024, cap // 24))
    limit = min(cap * 3 // 4, 100 * 1024 * 1024)
    return budget, limit


def _focal_from_ce(ce, w_t, valid, gamma):
    """ce is the *unweighted* CE; returns masked focal loss."""
    base = 1.0 - jnp.exp(-ce)
    g = float(gamma)
    if g.is_integer() and 0.0 <= g <= 8.0:
        factor = jnp.ones_like(base)
        for _ in range(int(g)):          # static unroll -> plain VPU muls
            factor = factor * base
    else:
        factor = jnp.power(jnp.maximum(base, 0.0), g)
    return jnp.where(valid, factor * (w_t * ce), 0.0)


# ---------------------------------------------------------------------------
# Kernel A: channels-first (N, C, spatial) layout.
#   t_ref  : (nb, 1, ts) int32 targets
#   s_ref  : (nb, C, ts) scores (any float dtype; math in f32)
#   wt_ref : (nb, 1, ts) f32 pre-gathered class weight of the target
#   o_ref  : (nb, 1, ts) per-element loss          (partial_out=False)
#            (1, 1, 8, 128) tile partial sum        (partial_out=True)
# ---------------------------------------------------------------------------
def _make_cf_kernel(gamma, ignore_index, partial_out):
    def kernel(t_ref, s_ref, wt_ref, o_ref):
        s = s_ref[...].astype(jnp.float32)                       # (nb, C, ts)
        tgt = t_ref[...]                                         # (nb, 1, ts)
        w_t = wt_ref[...]                                        # (nb, 1, ts)

        # log-softmax over the class (sublane) axis
        m = jnp.max(s, axis=1, keepdims=True)                    # (nb, 1, ts)
        e = jnp.exp(s - m)
        lse = m + jnp.log(jnp.sum(e, axis=1, keepdims=True))

        # target-class score via one-hot compare (iota over class axis)
        cls = jax.lax.broadcasted_iota(jnp.int32, s.shape, 1)
        s_t = jnp.sum(jnp.where(cls == tgt, s, 0.0), axis=1, keepdims=True)

        valid = tgt != ignore_index
        ce = jnp.where(valid, lse - s_t, 0.0)                    # unweighted CE
        f = _focal_from_ce(ce, w_t, valid, gamma)                # (nb, 1, ts)

        if partial_out:
            p = jnp.sum(f)                                       # tile partial sum
            sub = jax.lax.broadcasted_iota(jnp.int32, o_ref.shape, 2)
            lane = jax.lax.broadcasted_iota(jnp.int32, o_ref.shape, 3)
            o_ref[...] = jnp.where((sub == 0) & (lane == 0), p, 0.0)
        else:
            o_ref[...] = f

    return kernel


# ---------------------------------------------------------------------------
# Kernel B: native (N, C) classification layout (class axis on lanes).
#   t_ref  : (tn, 1) int32   s_ref : (tn, C)   wt_ref : (tn, 1) f32
#   o_ref  : (tn, 1) per-element loss / (1, 8, 128) tile partial sum
# ---------------------------------------------------------------------------
def _make_nc_kernel(gamma, ignore_index, partial_out):
    def kernel(t_ref, s_ref, wt_ref, o_ref):
        s = s_ref[...].astype(jnp.float32)                       # (tn, C)
        tgt = t_ref[...]                                         # (tn, 1)
        w_t = wt_ref[...]                                        # (tn, 1)

        m = jnp.max(s, axis=1, keepdims=True)
        e = jnp.exp(s - m)
        lse = m + jnp.log(jnp.sum(e, axis=1, keepdims=True))

        cls = jax.lax.broadcasted_iota(jnp.int32, s.shape, 1)
        s_t = jnp.sum(jnp.where(cls == tgt, s, 0.0), axis=1, keepdims=True)

        valid = tgt != ignore_index
        ce = jnp.where(valid, lse - s_t, 0.0)
        f = _focal_from_ce(ce, w_t, valid, gamma)                # (tn, 1)

        if partial_out:
            p = jnp.sum(f)
            sub = jax.lax.broadcasted_iota(jnp.int32, o_ref.shape, 1)
            lane = jax.lax.broadcasted_iota(jnp.int32, o_ref.shape, 2)
            o_ref[...] = jnp.where((sub == 0) & (lane == 0), p, 0.0)
        else:
            o_ref[...] = f

    return kernel


# ---------------------------------------------------------------------------
# channels-first path: scores (N, C, d1, d2, ...), targets (N, d1, d2, ...)
# ---------------------------------------------------------------------------
def _focal_cf(scores, targets, weight, gamma, reduce, ignore_index,
              budget, vmem_limit, total):
    N, C = scores.shape[0], scores.shape[1]
    S = 1
    for d in scores.shape[2:]:
        S *= d
    s3 = scores.reshape(N, C, S)                      # no data movement
    t2 = targets.reshape(N, S)

    # lane-dense spatial tile sized from the per-block byte budget
    budget_lanes = max(128, (budget // (C * 4)) // 128 * 128)
    sp128 = _round_up(S, 128)
    if sp128 <= budget_lanes:
        ts = sp128
        nb = _largest_divisor_leq(N, budget_lanes // ts)   # fold batch rows in
    else:
        ts = budget_lanes
        nb = 1
    Sp = _round_up(S, ts)

    if Sp != S:
        s3 = jnp.pad(s3, ((0, 0), (0, 0), (0, Sp - S)))
        t2 = jnp.pad(t2, ((0, 0), (0, Sp - S)), constant_values=ignore_index)

    # class-weight gather hoisted to XLA (O(N*S), ~1/C of the score stream)
    w2 = weight[jnp.clip(t2, 0, C - 1)].astype(jnp.float32)

    t3 = t2.reshape(N, 1, Sp)
    w3 = w2.reshape(N, 1, Sp)

    grid = (N // nb, Sp // ts)
    in_specs = [pl.BlockSpec((nb, 1, ts), lambda b, t: (b, 0, t)),
                pl.BlockSpec((nb, C, ts), lambda b, t: (b, 0, t)),
                pl.BlockSpec((nb, 1, ts), lambda b, t: (b, 0, t))]
    cp = pltpu.CompilerParams(dimension_semantics=("parallel", "parallel"),
                              vmem_limit_bytes=vmem_limit)

    if reduce:
        partials = pl.pallas_call(
            _make_cf_kernel(gamma, ignore_index, True),
            out_shape=jax.ShapeDtypeStruct((grid[0], grid[1], 8, 128),
                                           jnp.float32),
            grid=grid,
            in_specs=in_specs,
            out_specs=pl.BlockSpec((1, 1, 8, 128), lambda b, t: (b, t, 0, 0)),
            compiler_params=cp,
        )(t3, s3, w3)
        return jnp.sum(partials) / total              # torch.mean over all elems

    f3 = pl.pallas_call(
        _make_cf_kernel(gamma, ignore_index, False),
        out_shape=jax.ShapeDtypeStruct((N, 1, Sp), jnp.float32),
        grid=grid,
        in_specs=in_specs,
        out_specs=pl.BlockSpec((nb, 1, ts), lambda b, t: (b, 0, t)),
        compiler_params=cp,
    )(t3, s3, w3)
    return f3.reshape(N, Sp)[:, :S].reshape(targets.shape)


# ---------------------------------------------------------------------------
# classification path: scores (N, C), targets (N,) — no transpose.
# ---------------------------------------------------------------------------
def _focal_nc(scores, targets, weight, gamma, reduce, ignore_index,
              budget, vmem_limit, total):
    N, C = scores.shape
    tn = max(8, (budget // (C * 4)) // 8 * 8)
    tn = min(tn, _round_up(N, 8))
    Np = _round_up(N, tn)

    s2 = scores
    t2 = targets.reshape(N, 1)
    if Np != N:
        s2 = jnp.pad(s2, ((0, Np - N), (0, 0)))
        t2 = jnp.pad(t2, ((0, Np - N), (0, 0)), constant_values=ignore_index)
    w2 = weight[jnp.clip(t2, 0, C - 1)].astype(jnp.float32)      # (Np, 1)

    grid = (Np // tn,)
    in_specs = [pl.BlockSpec((tn, 1), lambda i: (i, 0)),
                pl.BlockSpec((tn, C), lambda i: (i, 0)),
                pl.BlockSpec((tn, 1), lambda i: (i, 0))]
    cp = pltpu.CompilerParams(dimension_semantics=("parallel",),
                              vmem_limit_bytes=vmem_limit)

    if reduce:
        partials = pl.pallas_call(
            _make_nc_kernel(gamma, ignore_index, True),
            out_shape=jax.ShapeDtypeStruct((grid[0], 8, 128), jnp.float32),
            grid=grid,
            in_specs=in_specs,
            out_specs=pl.BlockSpec((1, 8, 128), lambda i: (i, 0, 0)),
            compiler_params=cp,
        )(t2, s2, w2)
        return jnp.sum(partials) / total

    f2 = pl.pallas_call(
        _make_nc_kernel(gamma, ignore_index, False),
        out_shape=jax.ShapeDtypeStruct((Np, 1), jnp.float32),
        grid=grid,
        in_specs=in_specs,
        out_specs=pl.BlockSpec((tn, 1), lambda i: (i, 0)),
        compiler_params=cp,
    )(t2, s2, w2)
    return f2[:N, 0].reshape(targets.shape)


# ---------------------------------------------------------------------------
# Forward wrapper (== FocalLoss.forward).
# ---------------------------------------------------------------------------
def focal_loss_forward(scores, targets, weight, *, gamma=2.0, reduce=True,
                       ignore_index=-1):
    scores = jnp.asarray(scores)
    targets = jnp.asarray(targets, jnp.int32)
    weight = jnp.asarray(weight, jnp.float32)
    total = targets.size                              # torch.mean denominator
    budget, vmem_limit = _vmem_params()

    if scores.ndim == 2:
        return _focal_nc(scores, targets, weight, gamma, reduce, ignore_index,
                         budget, vmem_limit, total)
    return _focal_cf(scores, targets, weight, gamma, reduce, ignore_index,
                     budget, vmem_limit, total)


class FocalLoss:
    """Thin stateful wrapper mirroring the PyTorch module."""

    def __init__(self, weight, gamma=2, reduce=True, ignore_index=-1):
        self.weight = jnp.asarray(weight, jnp.float32)
        self.gamma = gamma
        self.reduce = reduce
        self.ignore_index = ignore_index

    def __call__(self, scores, targets):
        return focal_loss_forward(scores, targets, self.weight,
                                  gamma=self.gamma, reduce=self.reduce,
                                  ignore_index=self.ignore_index)


# ---------------------------------------------------------------------------
# Pure-JAX reference (for correctness check).
# ---------------------------------------------------------------------------
def _focal_ref(scores, targets, weight, gamma, ignore_index, reduce):
    if scores.ndim == 2:
        s3 = scores[:, :, None]
        t2 = targets[:, None]
    else:
        s3 = scores.reshape(scores.shape[0], scores.shape[1], -1)
        t2 = targets.reshape(targets.shape[0], -1)
    C = s3.shape[1]
    logp = jax.nn.log_softmax(s3, axis=1)
    t_safe = jnp.clip(t2, 0, C - 1)
    lp_t = jnp.take_along_axis(logp, t_safe[:, None, :], axis=1)[:, 0, :]
    valid = t2 != ignore_index
    ce_unw = jnp.where(valid, -lp_t, 0.0)
    w_t = jnp.where(valid, weight[t_safe], 0.0)
    f = (1.0 - jnp.exp(-ce_unw)) ** gamma * (w_t * ce_unw)
    f = jnp.where(valid, f, 0.0)
    if reduce:
        return jnp.mean(f)
    return f.reshape(targets.shape)


if __name__ == "__main__":
    key = jax.random.PRNGKey(0)
    k1, k2, k3, k4, k5, k6, k7 = jax.random.split(key, 7)

    # ---- segmentation-style: scores (N, C, H, W), targets (N, H, W) ----
    N, C, H, W = 2, 4, 16, 16
    scores = jax.random.normal(k1, (N, C, H, W), jnp.float32) * 2.0
    targets = jax.random.randint(k2, (N, H, W), 0, C).astype(jnp.int32)
    ignore_mask = jax.random.uniform(k3, (N, H, W)) < 0.1
    targets = jnp.where(ignore_mask, -1, targets)
    weight = jax.random.uniform(k4, (C,), jnp.float32, 0.5, 1.5)

    loss_fn = FocalLoss(weight, gamma=2, reduce=True, ignore_index=-1)
    loss = jax.block_until_ready(loss_fn(scores, targets))
    ref = _focal_ref(scores, targets, weight, 2.0, -1, True)
    assert jnp.allclose(loss, ref, atol=2e-5, rtol=2e-5), (float(loss), float(ref))

    f_el = jax.block_until_ready(
        focal_loss_forward(scores, targets, weight, gamma=2.0,
                           reduce=False, ignore_index=-1))
    ref_el = _focal_ref(scores, targets, weight, 2.0, -1, False)
    assert f_el.shape == targets.shape, f_el.shape
    assert jnp.allclose(f_el, ref_el, atol=2e-5, rtol=2e-5), \
        float(jnp.max(jnp.abs(f_el - ref_el)))

    # ---- classification-style: scores (N, C), targets (N,) — native path ----
    Nc, Cc = 16, 10
    sc = jax.random.normal(k5, (Nc, Cc), jnp.float32) * 2.0
    tc = jax.random.randint(k6, (Nc,), 0, Cc).astype(jnp.int32)
    tc = jnp.where(jax.random.uniform(k7, (Nc,)) < 0.2, -1, tc)
    wc = jnp.linspace(0.5, 1.5, Cc, dtype=jnp.float32)

    loss_c = jax.block_until_ready(
        focal_loss_forward(sc, tc, wc, gamma=2.0, reduce=True, ignore_index=-1))
    ref_c = _focal_ref(sc, tc, wc, 2.0, -1, True)
    assert jnp.allclose(loss_c, ref_c, atol=2e-5, rtol=2e-5), \
        (float(loss_c), float(ref_c))

    f_c = jax.block_until_ready(
        focal_loss_forward(sc, tc, wc, gamma=2.0, reduce=False, ignore_index=-1))
    ref_fc = _focal_ref(sc, tc, wc, 2.0, -1, False)
    assert f_c.shape == tc.shape, f_c.shape
    assert jnp.allclose(f_c, ref_fc, atol=2e-5, rtol=2e-5), \
        float(jnp.max(jnp.abs(f_c - ref_fc)))

    print("KERNEL_OK")
</pallas_src>

<mosaic_0001>
module attributes {stable_mosaic.version = 11 : i64} {
  func.func @kernel(%arg0: i32, %arg1: i32, %arg2: memref<2x1x256xi32, #tpu.memory_space<vmem>>, %arg3: memref<2x4x256xf32, #tpu.memory_space<vmem>>, %arg4: memref<2x1x256xf32, #tpu.memory_space<vmem>>, %arg5: memref<1x1x8x128xf32, #tpu.memory_space<vmem>>) attributes {dimension_semantics = [#tpu.dimension_semantics<parallel>, #tpu.dimension_semantics<parallel>], iteration_bounds = array<i64: 1, 1>, scalar_prefetch = 0 : i64, scratch_operands = 0 : i64, tpu.core_type = #tpu.core_type<tc>, window_params = [{transform_indices = @transform_0, window_bounds = array<i64: 2, 1, 256>}, {transform_indices = @transform_1, window_bounds = array<i64: 2, 4, 256>}, {transform_indices = @transform_2, window_bounds = array<i64: 2, 1, 256>}, {transform_indices = @transform_3, window_bounds = array<i64: 1, 1, 8, 128>}]} {
    %c0 = arith.constant 0 : index
    %c0_0 = arith.constant 0 : index
    %c0_1 = arith.constant 0 : index
    %0 = vector.load %arg3[%c0, %c0_0, %c0_1] : memref<2x4x256xf32, #tpu.memory_space<vmem>>, vector<2x4x256xf32>
    %c0_2 = arith.constant 0 : index
    %c0_3 = arith.constant 0 : index
    %c0_4 = arith.constant 0 : index
    %1 = vector.load %arg2[%c0_2, %c0_3, %c0_4] : memref<2x1x256xi32, #tpu.memory_space<vmem>>, vector<2x1x256xi32>
    %c0_5 = arith.constant 0 : index
    %c0_6 = arith.constant 0 : index
    %c0_7 = arith.constant 0 : index
    %2 = vector.load %arg4[%c0_5, %c0_6, %c0_7] : memref<2x1x256xf32, #tpu.memory_space<vmem>>, vector<2x1x256xf32>
    %cst = arith.constant dense<0xFF800000> : vector<2x256xf32>
    %3 = vector.multi_reduction <maximumf>, %0, %cst [1] : vector<2x4x256xf32> to vector<2x256xf32>
    %4 = vector.shape_cast %3 : vector<2x256xf32> to vector<2x1x256xf32>
    %5 = vector.broadcast %4 : vector<2x1x256xf32> to vector<2x4x256xf32>
    %6 = arith.subf %0, %5 : vector<2x4x256xf32>
    %7 = math.exp %6 : vector<2x4x256xf32>
    %cst_8 = arith.constant dense<0.000000e+00> : vector<2x256xf32>
    %8 = vector.multi_reduction <add>, %7, %cst_8 [1] : vector<2x4x256xf32> to vector<2x256xf32>
    %9 = vector.shape_cast %8 : vector<2x256xf32> to vector<2x1x256xf32>
    %10 = math.log %9 : vector<2x1x256xf32>
    %11 = arith.addf %4, %10 : vector<2x1x256xf32>
    %12 = tpu.iota {dimensions = array<i32: 1>} : vector<2x4x256xi32>
    %13 = vector.broadcast %1 : vector<2x1x256xi32> to vector<2x4x256xi32>
    %14 = arith.cmpi eq, %12, %13 : vector<2x4x256xi32>
    %cst_9 = arith.constant 0.000000e+00 : f32
    %15 = vector.broadcast %cst_9 : f32 to vector<2x4x256xf32>
    %16 = arith.select %14, %0, %15 : vector<2x4x256xi1>, vector<2x4x256xf32>
    %cst_10 = arith.constant dense<0.000000e+00> : vector<2x256xf32>
    %17 = vector.multi_reduction <add>, %16, %cst_10 [1] : vector<2x4x256xf32> to vector<2x256xf32>
    %18 = vector.shape_cast %17 : vector<2x256xf32> to vector<2x1x256xf32>
    %c-1_i32 = arith.constant -1 : i32
    %19 = vector.broadcast %c-1_i32 : i32 to vector<2x1x256xi32>
    %20 = arith.cmpi ne, %1, %19 : vector<2x1x256xi32>
    %21 = arith.subf %11, %18 : vector<2x1x256xf32>
    %cst_11 = arith.constant 0.000000e+00 : f32
    %22 = vector.broadcast %cst_11 : f32 to vector<2x1x256xf32>
    %23 = arith.select %20, %21, %22 : vector<2x1x256xi1>, vector<2x1x256xf32>
    %cst_12 = arith.constant 0.000000e+00 : f32
    %24 = vector.broadcast %cst_12 : f32 to vector<2x1x256xf32>
    %25 = arith.subf %24, %23 : vector<2x1x256xf32>
    %26 = math.exp %25 : vector<2x1x256xf32>
    %cst_13 = arith.constant 1.000000e+00 : f32
    %27 = vector.broadcast %cst_13 : f32 to vector<2x1x256xf32>
    %28 = arith.subf %27, %26 : vector<2x1x256xf32>
    %cst_14 = arith.constant 1.000000e+00 : f32
    %29 = vector.broadcast %cst_14 : f32 to vector<2x1x256xf32>
    %30 = arith.mulf %29, %28 : vector<2x1x256xf32>
    %31 = arith.mulf %30, %28 : vector<2x1x256xf32>
    %32 = arith.mulf %2, %23 : vector<2x1x256xf32>
    %33 = arith.mulf %31, %32 : vector<2x1x256xf32>
    %cst_15 = arith.constant 0.000000e+00 : f32
    %34 = vector.broadcast %cst_15 : f32 to vector<2x1x256xf32>
    %35 = arith.select %20, %33, %34 : vector<2x1x256xi1>, vector<2x1x256xf32>
    %36 = vector.shape_cast %35 : vector<2x1x256xf32> to vector<1x2x1x256xf32>
    %cst_16 = arith.constant dense<0.000000e+00> : vector<1xf32>
    %37 = vector.multi_reduction <add>, %36, %cst_16 [1, 2, 3] : vector<1x2x1x256xf32> to vector<1xf32>
    %38 = vector.shape_cast %37 : vector<1xf32> to vector<1x1x1x1xf32>
    %39 = vector.extract %38[0, 0, 0, 0] : f32 from vector<1x1x1x1xf32>
    %40 = tpu.iota {dimensions = array<i32: 2>} : vector<1x1x8x128xi32>
    %41 = tpu.iota {dimensions = array<i32: 3>} : vector<1x1x8x128xi32>
    %c0_i32 = arith.constant 0 : i32
    %42 = vector.broadcast %c0_i32 : i32 to vector<1x1x8x128xi32>
    %43 = arith.cmpi eq, %40, %42 : vector<1x1x8x128xi32>
    %c0_i32_17 = arith.constant 0 : i32
    %44 = vector.broadcast %c0_i32_17 : i32 to vector<1x1x8x128xi32>
    %45 = arith.cmpi eq, %41, %44 : vector<1x1x8x128xi32>
    %46 = arith.andi %43, %45 : vector<1x1x8x128xi1>
    %cst_18 = arith.constant 0.000000e+00 : f32
    %47 = vector.broadcast %39 : f32 to vector<1x1x8x128xf32>
    %48 = vector.broadcast %cst_18 : f32 to vector<1x1x8x128xf32>
    %49 = arith.select %46, %47, %48 : vector<1x1x8x128xi1>, vector<1x1x8x128xf32>
    %c0_19 = arith.constant 0 : index
    %c0_20 = arith.constant 0 : index
    %c0_21 = arith.constant 0 : index
    %c0_22 = arith.constant 0 : index
    %50 = vector.load %arg5[%c0_19, %c0_20, %c0_21, %c0_22] : memref<1x1x8x128xf32, #tpu.memory_space<vmem>>, vector<1x1x8x128xf32>
    tpu.vector_store %arg5[%c0_19, %c0_20, %c0_21, %c0_22], %49 {strides = array<i32>} : memref<1x1x8x128xf32, #tpu.memory_space<vmem>>, vector<1x1x8x128xf32>,
    return
  }
  func.func @transform_0(%arg0: i32, %arg1: i32) -> (i32, i32, i32) {
    %c0_i32 = arith.constant 0 : i32
    %c0_i32_0 = arith.constant 0 : i32
    return %arg0, %c0_i32, %arg1 : i32, i32, i32
  }
  func.func @transform_1(%arg0: i32, %arg1: i32) -> (i32, i32, i32) {
    %c0_i32 = arith.constant 0 : i32
    %c0_i32_0 = arith.constant 0 : i32
    return %arg0, %c0_i32, %arg1 : i32, i32, i32
  }
  func.func @transform_2(%arg0: i32, %arg1: i32) -> (i32, i32, i32) {
    %c0_i32 = arith.constant 0 : i32
    %c0_i32_0 = arith.constant 0 : i32
    return %arg0, %c0_i32, %arg1 : i32, i32, i32
  }
  func.func @transform_3(%arg0: i32, %arg1: i32) -> (i32, i32, i32, i32) {
    %c0_i32 = arith.constant 0 : i32
    %c0_i32_0 = arith.constant 0 : i32
    %c0_i32_1 = arith.constant 0 : i32
    return %arg0, %arg1, %c0_i32, %c0_i32_0 : i32, i32, i32, i32
  }
}

</mosaic_0001>

<bundles_post_ra>
// kernel: tpu_custom_call.1
= control target key start
LH: loop header
LB: loop body
LE: loop exit
PB: predicated region body
PF: predicated region fallthrough
CT: control target
= control target key end

     0   :  { %8 = vsyncpa [#allocation3], 0  ;;  %s607_s0 = inlined_call_operand.hbm [shape: s32[2,1,256], index: 0, kind: input, shape index: {}]   ;;  %s608_s1 = inlined_call_operand.hbm [shape: f32[2,4,256], index: 1, kind: input, shape index: {}]   ;;  %s609_s2 = inlined_call_operand.vmem [shape: f32[2,1,256], index: 2, kind: input, shape index: {}]   ;;  %s610_s3 = inlined_call_operand.hbm [shape: f32[1,1,8,128], index: 3, kind: output, shape index: {}]  }
   0x1   :  { %9 = vsyncpa [#allocation6], 0 }
   0x2   :  { %10 = vsyncpa [#allocation4], 0  ;;  %s421_s12 = smov [#allocation2]   ;;  %s349_s16 = scalar_lea.hbm %s607_s0, 64 }
   0x3   :  { %s16_s13 = sshll.u32 %s421_s12, 4  ;;  %p350_p0 = scmp.ne.s32.totalorder %s607_s0, %s349_s16  ;;  %s17_s13 = int_to_ptr.vmem [resolvable:$true] %s16_s13 }
   0x4   :  { %p353_p1 = scmp.lt.u32.totalorder %s349_s16, %s607_s0 }
   0x6   :  { %p355_p2 = pnand %p353_p1, %p350_p0 }
   0x8   :  { %358 = shalt.err (!%p355_p2)
}
   0x9   :  { %s359_s21 = scalar_lea.vmem %s17_s13, 64  ;;  %p364_p4 = scmp.lt.s32.totalorder %s17_s13, %s17_s13 }
   0xa   :  { %p360_p3 = scmp.ne.s32.totalorder %s17_s13, %s359_s21  ;;  %p365_p5 = scmp.lt.s32.totalorder %s359_s21, %s359_s21 }
   0xc   :  { %p366_p6 = por %p365_p5, %p364_p4 }
   0xe   :  { %p367_p7 = pnand %p366_p6, %p360_p3 }
  0x10   :  { %370 = shalt.err (!%p367_p7)
}
  0x11   :  { %s422_s22 = smov 32   ;;  %s423_s23 = smov 2  }
  0x12   :  { %22 = dma.hbm_to_vmem [thread:$0]  %s607_s0, 64, %s17_s13, [#allocation3], %s422_s22, %s422_s22, %s423_s23  }
  0x13   :  { %s424_s26 = smov [#allocation5]   ;;  %s371_s30 = scalar_lea.hbm %s608_s1, 256 }
  0x14   :  { %s28_s27 = sshll.u32 %s424_s26, 4  ;;  %p372_p8 = scmp.ne.s32.totalorder %s608_s1, %s371_s30  ;;  %s29_s27 = int_to_ptr.vmem [resolvable:$true] %s28_s27 }
  0x15   :  { %p375_p9 = scmp.lt.u32.totalorder %s371_s30, %s608_s1 }
  0x17   :  { %p377_p10 = pnand %p375_p9, %p372_p8 }
  0x19   :  { %380 = shalt.err (!%p377_p10)
}
  0x1a   :  { %s381_s8 = scalar_lea.vmem %s29_s27, 256  ;;  %p386_p12 = scmp.lt.s32.totalorder %s29_s27, %s29_s27 }
  0x1b   :  { %p382_p11 = scmp.ne.s32.totalorder %s29_s27, %s381_s8  ;;  %p387_p13 = scmp.lt.s32.totalorder %s381_s8, %s381_s8 }
  0x1d   :  { %p388_p0 = por %p387_p13, %p386_p12 }
  0x1f   :  { %p389_p1 = pnand %p388_p0, %p382_p11 }
  0x21   :  { %392 = shalt.err (!%p389_p1)
}
  0x22   :  { %s425_s0 = smov 128   ;;  %s426_s9 = smov 8  }
  0x23   :  { %34 = dma.hbm_to_vmem [thread:$0]  %s608_s1, 256, %s29_s27, [#allocation6], %s425_s0, %s425_s0, %s426_s9  }
  0x24   :  { %415 = dma.done.wait [#allocation3], 64  }
  0x25   :  { %416 = vsyncadd [#allocation3], 4294967232 }
  0x26   :  { %417 = dma.done.wait [#allocation6], 256  }
  0x27   :  { %418 = vsyncadd [#allocation6], 4294967040  ;;  %vm55_vm0 = vcmask 1043456   ;;  %v473_v0 = vld [vmem:[#allocation5] sm:$0xff]  ;;  %v475_v1 = vld [vmem:[#allocation5 + $0x8] sm:$0xff]  ;;  %v144_v28 = vlaneseq  ;;  %vm280_vm7 = vcmask 1040384  }
  0x28   :  { %v479_v2 = vcombine.high %v473_v0, %v473_v0  ;;  %v483_v3 = vcombine.high %v475_v1, %v475_v1  ;;  %v56_v4 = vsel %vm55_vm0, %v473_v0, -inf  ;;  %v70_v5 = vsel %vm55_vm0, %v475_v1, -inf  ;;  %v513_v41 = vld [vmem:[#allocation2] sm:$0x3]  ;;  %v515_v42 = vld [vmem:[#allocation2 + $0x2] sm:$0x3] }
  0x29   :  { %v57_v6 = vrot.slane %v56_v4, 4  ;;  %v71_v8 = vrot.slane %v70_v5, 4  ;;  %v506_v35 = vshrl.u32 %v144_v28, 7  ;;  %vm198_vm5 = vcmp.ne.s32.totalorder %v513_v41, 4294967295 }
  0x2a   :  { %v63_v7 = vsel %vm55_vm0, %v479_v2, -inf  ;;  %v77_v9 = vsel %vm55_vm0, %v483_v3, -inf  ;;  %vm199_vm6 = vcmp.ne.s32.totalorder %v515_v42, 4294967295 }
  0x2b   :  { %v64_v10 = vrot.slane %v63_v7, 4  ;;  %v78_v11 = vrot.slane %v77_v9, 4  ;;  %v58_v12 = vmax.f32 %v56_v4, %v57_v6  ;;  %v72_v13 = vmax.f32 %v70_v5, %v71_v8 }
  0x2c   :  { %v511_v40 = vsub.s32 0, %v506_v35  ;;  %v518_v43 = vsub.s32 1, %v506_v35  ;;  %vm299_vm8 = vcmp.eq.s32.totalorder %v506_v35, 0 }
  0x2d   :  { %v65_v14 = vmax.f32 %v63_v7, %v64_v10  ;;  %v79_v15 = vmax.f32 %v77_v9, %v78_v11  ;;  %v59_v16 = vrot.slane %v58_v12, 2  ;;  %v73_v17 = vrot.slane %v72_v13, 2 }
  0x2e   :  { %v149_v44 = vrot.slane %v513_v41, %v511_v40  ;;  %v157_v45 = vrot.slane %v515_v42, %v511_v40  ;;  %v153_v46 = vrot.slane %v513_v41, %v518_v43  ;;  %v161_v47 = vrot.slane %v515_v42, %v518_v43 }
  0x2f   :  { %v66_v18 = vrot.slane %v65_v14, 2  ;;  %v80_v19 = vrot.slane %v79_v15, 2  ;;  %v60_v20 = vmax.f32 %v58_v12, %v59_v16  ;;  %v74_v21 = vmax.f32 %v72_v13, %v73_v17 }
  0x30   :  { %vm529_vm1 = vcmp.eq.s32.totalorder %v506_v35, %v149_v44  ;;  %vm534_vm2 = vcmp.eq.s32.totalorder %v506_v35, %v157_v45  ;;  %vm539_vm3 = vcmp.eq.s32.totalorder %v506_v35, %v153_v46  ;;  %vm544_vm4 = vcmp.eq.s32.totalorder %v506_v35, %v161_v47 }
  0x31   :  { %v67_v22 = vmax.f32 %v65_v14, %v66_v18  ;;  %v81_v23 = vmax.f32 %v79_v15, %v80_v19  ;;  %v61_v24 = vrot.slane %v60_v20, 1  ;;  %v75_v25 = vrot.slane %v74_v21, 1 }
  0x32   :  { %v166_v52 = vsel %vm529_vm1, %v473_v0, 0.0  ;;  %v168_v54 = vsel %vm534_vm2, %v475_v1, 0.0  ;;  %v167_v58 = vsel %vm539_vm3, %v479_v2, 0.0  ;;  %v169_v59 = vsel %vm544_vm4, %v483_v3, 0.0 }
  0x33   :  { %v68_v26 = vrot.slane %v67_v22, 1  ;;  %v82_v27 = vrot.slane %v81_v23, 1  ;;  %v493_v29 = vmax.f32 %v60_v20, %v61_v24  ;;  %v495_v30 = vmax.f32 %v74_v21, %v75_v25 }
  0x34   :  { %v170_v63 = vsel %vm55_vm0, %v166_v52, 0.0  ;;  %v184_v4 = vsel %vm55_vm0, %v168_v54, 0.0  ;;  %v177_v2 = vsel %vm55_vm0, %v167_v58, 0.0  ;;  %v191_v10 = vsel %vm55_vm0, %v169_v59, 0.0 }
  0x35   :  { %v497_v31 = vmax.f32 %v67_v22, %v68_v26  ;;  %v499_v32 = vmax.f32 %v81_v23, %v82_v27  ;;  %v171_v3 = vrot.slane %v170_v63, 4  ;;  %v185_v13 = vrot.slane %v184_v4, 4 }
  0x36   :  { %v178_v16 = vrot.slane %v177_v2, 4  ;;  %v192_v19 = vrot.slane %v191_v10, 4 }
  0x37   :  { %v88_v33 = vcombine.low %v493_v29, %v497_v31  ;;  %v89_v34 = vcombine.low %v495_v30, %v499_v32  ;;  %v172_v22 = vadd.f32 %v171_v3, %v170_v63  ;;  %v186_v25 = vadd.f32 %v185_v13, %v184_v4 }
  0x39   :  { %v92_v36 = vsub.f32 %v473_v0, %v88_v33  ;;  %v93_v37 = vsub.f32 %v475_v1, %v89_v34  ;;  %v179_v33 = vadd.f32 %v178_v16, %v177_v2  ;;  %v173_v44 = vrot.slane %v172_v22, 2 }
  0x3a   :  { %v187_v46 = vrot.slane %v186_v25, 2 }
  0x3b   :  { %v94_v38 = vmul.f32 1.442695, %v92_v36  ;;  %v96_v39 = vmul.f32 1.442695, %v93_v37  ;;  %v193_v37 = vadd.f32 %v192_v19, %v191_v10  ;;  %v180_v48 = vrot.slane %v179_v33, 2 }
  0x3c   :  { %v174_v50 = vadd.f32 %v173_v44, %v172_v22  ;;  %v188_v51 = vadd.f32 %v187_v46, %v186_v25 }
  0x3d   :  { %333 = vpow2.f32 %v94_v38  ;;  %v194_v49 = vrot.slane %v193_v37, 2  ;;  %v181_v52 = vadd.f32 %v180_v48, %v179_v33 }
  0x3e   :  { %335 = vpow2.f32 %v96_v39  ;;  %v175_v54 = vrot.slane %v174_v50, 1 }
  0x40   :  { %v176_v63 = vadd.f32 %v175_v54, %v174_v50 }
  0x47   :  { %v334_v53 = vpop.eup %333 }
  0x48   :  { %v336_v55 = vpop.eup %335  ;;  %v100_v56 = vcombine.high %v334_v53, %v334_v53  ;;  %v104_v57 = vsel %vm55_vm0, %v334_v53, 0.0  ;;  %v195_v53 = vadd.f32 %v194_v49, %v193_v37 }
  0x49   :  { %v101_v60 = vcombine.high %v336_v55, %v336_v55  ;;  %v105_v61 = vrot.slane %v104_v57, 4  ;;  %v118_v62 = vsel %vm55_vm0, %v336_v55, 0.0  ;;  %v189_v55 = vrot.slane %v188_v51, 1 }
  0x4a   :  { %v111_v0 = vsel %vm55_vm0, %v100_v56, 0.0  ;;  %v119_v1 = vrot.slane %v118_v62, 4  ;;  %v182_v56 = vrot.slane %v181_v52, 1 }
  0x4b   :  { %v106_v5 = vadd.f32 %v105_v61, %v104_v57  ;;  %v112_v6 = vrot.slane %v111_v0, 4  ;;  %v125_v7 = vsel %vm55_vm0, %v101_v60, 0.0  ;;  %v427_v57 = vmov 1966171168  }
  0x4c   :  { %v120_v8 = vadd.f32 %v119_v1, %v118_v62  ;;  %v126_v9 = vrot.slane %v125_v7, 4  ;;  %v210_v58 = vunpack.c.l.s4 %v427_v57  ;;  %v196_v60 = vrot.slane %v195_v53, 1 }
  0x4d   :  { %v107_v11 = vrot.slane %v106_v5, 2  ;;  %v113_v12 = vadd.f32 %v112_v6, %v111_v0  ;;  %v190_v4 = vadd.f32 %v189_v55, %v188_v51  ;;  %v183_v2 = vadd.f32 %v182_v56, %v181_v52 }
  0x4e   :  { %v121_v14 = vrot.slane %v120_v8, 2  ;;  %v127_v15 = vadd.f32 %v126_v9, %v125_v7  ;;  %v197_v10 = vadd.f32 %v196_v60, %v195_v53 }
  0x4f   :  { %v108_v17 = vadd.f32 %v107_v11, %v106_v5  ;;  %v114_v18 = vrot.slane %v113_v12, 2 }
  0x50   :  { %v122_v20 = vadd.f32 %v121_v14, %v120_v8  ;;  %v128_v21 = vrot.slane %v127_v15, 2  ;;  %v211_v8 = vunpack.c.0.s8 %v210_v58 }
  0x51   :  { %v109_v23 = vrot.slane %v108_v17, 1  ;;  %v115_v24 = vadd.f32 %v114_v18, %v113_v12 }
  0x52   :  { %v123_v26 = vrot.slane %v122_v20, 1  ;;  %v129_v27 = vadd.f32 %v128_v21, %v127_v15  ;;  %v214_v16 = vsub.s32 %v211_v8, %v506_v35 }
  0x53   :  { %v110_v34 = vadd.f32 %v109_v23, %v108_v17  ;;  %v116_v36 = vrot.slane %v115_v24, 1 }
  0x54   :  { %v124_v38 = vadd.f32 %v123_v26, %v122_v20  ;;  %v130_v39 = vrot.slane %v129_v27, 1  ;;  %v47_v26 = vld [vmem:[%s609_s2] sm:$0x3] }
  0x55   :  { %v117_v45 = vadd.f32 %v116_v36, %v115_v24  ;;  %337 = vlog2.f32 %v110_v34 }
  0x56   :  { %v131_v47 = vadd.f32 %v130_v39, %v129_v27  ;;  %339 = vlog2.f32 %v124_v38  ;;  %v48_v27 = vld [vmem:[%s609_s2 + $0x2] sm:$0x3]  ;;  %s428_s2 = smov [#allocation7]  }
  0x57   :  { %341 = vlog2.f32 %v117_v45  ;;  %s311_s15 = sshll.u32 %s428_s2, 4  ;;  %s312_s15 = int_to_ptr.vmem [resolvable:$true] %s311_s15 }
  0x58   :  { %343 = vlog2.f32 %v131_v47  ;;  %s393_s17 = scalar_lea.vmem %s312_s15, 128  ;;  %p398_p3 = scmp.lt.s32.totalorder %s312_s15, %s312_s15 }
  0x59   :  { %p394_p2 = scmp.ne.s32.totalorder %s312_s15, %s393_s17  ;;  %p399_p4 = scmp.lt.s32.totalorder %s393_s17, %s393_s17 }
  0x5b   :  { %p400_p5 = por %p399_p4, %p398_p3 }
  0x5d   :  { %p401_p6 = pnand %p400_p5, %p394_p2 }
  0x5f   :  { %v338_v59 = vpop.eup %337 }
  0x60   :  { %v340_v61 = vpop.eup %339  ;;  %v133_v62 = vmul.f32 0.6931472, %v338_v59 }
  0x61   :  { %v342_v0 = vpop.eup %341  ;;  %v137_v1 = vmul.f32 0.6931472, %v340_v61 }
  0x62   :  { %v344_v5 = vpop.eup %343  ;;  %v135_v6 = vmul.f32 0.6931472, %v342_v0  ;;  %v140_v7 = vadd.f32 %v133_v62, %v493_v29 }
  0x63   :  { %v139_v9 = vmul.f32 0.6931472, %v344_v5  ;;  %v142_v3 = vadd.f32 %v137_v1, %v495_v30 }
  0x64   :  { %v141_v11 = vadd.f32 %v135_v6, %v497_v31  ;;  %v200_v12 = vsub.f32 %v140_v7, %v176_v63 }
  0x65   :  { %v143_v13 = vadd.f32 %v139_v9, %v499_v32  ;;  %v202_v14 = vsub.f32 %v142_v3, %v190_v4 }
  0x66   :  { %v201_v15 = vsub.f32 %v141_v11, %v183_v2 }
  0x67   :  { %v203_v17 = vsub.f32 %v143_v13, %v197_v10 }
  0x68   :  { %v208_v18 = vcombine.low %v200_v12, %v201_v15 }
  0x69   :  { %v223_v19 = vcombine.low %v202_v14, %v203_v17 }
  0x6a   :  { %v215_v20 = vrot.slane %v208_v18, %v214_v16 }
  0x6b   :  { %v230_v29 = vrot.slane %v223_v19, %v214_v16 }
  0x6c   :  { %v222_v30 = vrot.slane %v215_v20, %v214_v16 }
  0x6d   :  { %v237_v21 = vrot.slane %v230_v29, %v214_v16 }
  0x6e   :  { %v240_v31 = vsel %vm198_vm5, %v222_v30, 0.0 }
  0x6f   :  { %v241_v32 = vsel %vm199_vm6, %v237_v21, 0.0  ;;  %v242_v22 = vsub.f32 0.0, %v240_v31  ;;  %v252_v37 = vmul.f32 %v240_v31, %v47_v26 }
  0x70   :  { %v243_v23 = vsub.f32 0.0, %v241_v32  ;;  %v253_v39 = vmul.f32 %v241_v32, %v48_v27 }
  0x71   :  { %v244_v24 = vmul.f32 1.442695, %v242_v22 }
  0x72   :  { %v246_v25 = vmul.f32 1.442695, %v243_v23 }
  0x73   :  { %345 = vpow2.f32 %v244_v24 }
  0x74   :  { %347 = vpow2.f32 %v246_v25 }
  0x7d   :  { %v346_v33 = vpop.eup %345 }
  0x7e   :  { %v348_v34 = vpop.eup %347  ;;  %v248_v36 = vsub.f32 1.0, %v346_v33 }
  0x7f   :  { %v249_v38 = vsub.f32 1.0, %v348_v34 }
  0x80   :  { %v250_v44 = vmul.f32 %v248_v36, %v248_v36 }
  0x81   :  { %v251_v45 = vmul.f32 %v249_v38, %v249_v38 }
  0x82   :  { %v254_v46 = vmul.f32 %v252_v37, %v250_v44 }
  0x83   :  { %v255_v47 = vmul.f32 %v253_v39, %v251_v45 }
  0x84   :  { %v256_v48 = vsel %vm198_vm5, %v254_v46, 0.0 }
  0x85   :  { %v257_v49 = vsel %vm199_vm6, %v255_v47, 0.0  ;;  %v263_v50 = vrot.slane %v256_v48, %v511_v40  ;;  %v267_v51 = vrot.slane %v256_v48, %v518_v43 }
  0x86   :  { %v271_v52 = vrot.slane %v257_v49, %v511_v40  ;;  %v275_v53 = vrot.slane %v257_v49, %v518_v43  ;;  %v298_v40 = vand.u32 127, %v144_v28 }
  0x87   :  { %v281_v54 = vsel %vm280_vm7, %v263_v50, 0.0  ;;  %v282_v55 = vsel %vm280_vm7, %v267_v51, 0.0 }
  0x88   :  { %v283_v56 = vadd.f32 %v282_v55, %v281_v54  ;;  %v284_v57 = vsel %vm280_vm7, %v271_v52, 0.0  ;;  %v286_v58 = vsel %vm280_vm7, %v275_v53, 0.0  ;;  %vm300_vm9 = vcmp.eq.s32.totalorder %v298_v40, 0 }
  0x89   :  { %vm301_vm10 = vmand %vm299_vm8, %vm300_vm9 }
  0x8a   :  { %v285_v59 = vadd.f32 %v284_v57, %v283_v56 }
  0x8c   :  { %v287_v41 = vadd.f32 %v286_v58, %v285_v59 }
  0x8e   :  { %288 = vadd.xlane.f32.xlu0 %v287_v41 }
 0x11b   :  { %v289_v60 = vpop.xlane.xlu0 %288 }
 0x11c   :  { %v290_v61 = vrot.slane %v289_v60, 4 }
 0x11e   :  { %v291_v42 = vadd.f32 %v290_v61, %v289_v60 }
 0x120   :  { %v292_v62 = vrot.slane %v291_v42, 2 }
 0x122   :  { %v293_v63 = vadd.f32 %v292_v62, %v291_v42 }
 0x124   :  { %v294_v0 = vrot.slane %v293_v63, 1 }
 0x126   :  { %v295_v1 = vadd.f32 %v294_v0, %v293_v63 }
 0x128   :  { %321 = vpush %v295_v1 }
 0x159   :  { %s322_s16 = spop %321 }
 0x15a   :  { %v302_v43 = vstv %s322_s16 }
 0x15b   :  { %v303_v4 = vsel %vm301_vm10, %v302_v43, 0.0 }
 0x15c   :  { %304 = vst [vmem:[#allocation7] sm:$0xff] %v303_v4 }
 0x15d   :  { %404 = shalt.err (!%p401_p6)
}
 0x15e   :  { %s405_s20 = scalar_lea.hbm %s610_s3, 128 }
 0x15f   :  { %p406_p7 = scmp.ne.s32.totalorder %s610_s3, %s405_s20  ;;  %p409_p8 = scmp.lt.u32.totalorder %s405_s20, %s610_s3 }
 0x161   :  { %p411_p9 = pnand %p409_p8, %p406_p7 }
 0x163   :  { %414 = shalt.err (!%p411_p9)
}
 0x164   :  { %314 = dma.vmem_to_hbm [thread:$0]  %s312_s15, 128, %s610_s3, [#allocation4]  }
 0x165   :  { %419 = dma.done.wait [#allocation4], 128  }
 0x166   :  { %420 = vsyncadd [#allocation4], 4294967168 }
 0x167   :  { %318 = vsyncpa [#allocation3], 1 }
 0x168   :  { %319 = vsyncpa [#allocation6], 1 }
 0x169   :  { %320 = vsyncpa [#allocation4], 1 }

</bundles_post_ra>
